<compile_context>
chip_gen: v6e
topology: v6e:2x2x1
jax: 0.10.0
libtpu: 0.0.40
codegen_flags: <defaults>
</compile_context>

<pallas_src>
import jax
import jax.numpy as jnp
from jax.experimental import pallas as pl
from jax.experimental.pallas import tpu as pltpu


# ----------------------------- Pallas kernel --------------------------------

def _se_kernel(x_ref, w1_ref, w2_ref, o_ref):
    # x_ref / o_ref: [bt, C, N]  (C on sublanes, N = H*W on lanes, lane-dense)
    # w1_ref: [C, Ch]   w2_ref: [Ch, C]   (both [in, out] -> transpose-free)

    # 1) global average pool over the spatial (lane) axis -- XLU cross-lane reduce.
    pooled = jnp.mean(x_ref[...], axis=-1)                                 # [bt, C]

    # 2) squeeze-excite MLP (tiny MXU matmuls, f32 epilogue on VPU/EUP).
    h = jnp.dot(pooled, w1_ref[...], preferred_element_type=jnp.float32)  # [bt, Ch]
    h = jnp.where(h > 0, h, 0.2 * h)                                      # LeakyReLU(0.2)
    z = jnp.dot(h, w2_ref[...], preferred_element_type=jnp.float32)       # [bt, C]
    # Sigmoid; approx reciprocal runs on the EUP slot.  (Use approx=False if
    # tighter than ~1e-3 relative numerics is ever required.)
    s = pl.reciprocal(1.0 + jnp.exp(-z), approx=True)                     # [bt, C]

    # 3) re-index the resident VMEM tile (short live range) and scale it with a
    #    per-(batch, channel) column broadcast over the lane axis.
    o_ref[...] = x_ref[...] * s[:, :, None]


# ----------------------------- wrapper ---------------------------------------

def _multi_tensorcore_semantics():
    """Best-effort: how to split a per-batch grid axis across TensorCores.

    Returns a GridDimensionSemantics if the local device exposes more than one
    TensorCore (v7x: 2 TCs/chip; v4/v5p megacore), else None (v5e / v6e have a
    single TC, so a batch grid would only add per-step overhead)."""
    try:
        dev = jax.devices()[0]
        kind = str(getattr(dev, "device_kind", "")).lower().replace(" ", "")
        if "v7" in kind or kind.startswith("tpu7"):
            return pltpu.CORE_PARALLEL           # real 2-TC split on v7x
        if "v4" in kind or "v5p" in kind:
            return pltpu.PARALLEL                # megacore sharding
        if int(getattr(dev, "num_cores", 1) or 1) > 1:
            return pltpu.PARALLEL
    except Exception:
        pass
    return None


def se_block_forward(x_nchw, w1, w2):
    """SEBlock forward.

    x_nchw: [B, C, H, W] float32 (same layout as the PyTorch module).
    w1:     [C, C//r]  == torch fc[0].weight.T  (Linear(channel, channel//r, bias=False))
    w2:     [C//r, C]  == torch fc[2].weight.T  (Linear(channel//r, channel, bias=False))
    """
    B, C, H, W = x_nchw.shape
    Cin, Ch = w1.shape
    assert Cin == C, f"w1 must be [C, C//r] (torch weight transposed); got {w1.shape} for C={C}"
    assert w2.shape == (Ch, C), f"w2 must be [C//r, C] (torch weight transposed); got {w2.shape}"
    N = H * W

    # Free reshape (no transpose, no extra HBM traffic): [B, C, N].
    x = x_nchw.reshape(B, C, N).astype(jnp.float32)

    core_sem = _multi_tensorcore_semantics()
    if core_sem is not None and B > 1:
        bt, sem = 1, core_sem            # one batch element per TensorCore step
    else:
        bt, sem = B, pltpu.ARBITRARY     # 1-TC chip: fold the batch, one step
    grid = (B // bt,)

    # TODO(synk): for spatial sizes where the [bt, C, N] f32 block (charged ~4x
    # with in+out double buffering) no longer fits scoped VMEM (v5e default
    # 16 MiB, v6e/v7x 32 MiB scoped; on v7x's 64 MiB part keep N*C*4 <~ 8-12 MiB
    # and raise vmem_limit_bytes to at most ~48 MiB), switch to a two-pass
    # spatial-tiled reduce + spatial-tiled scale pipeline.
    out = pl.pallas_call(
        _se_kernel,
        out_shape=jax.ShapeDtypeStruct((B, C, N), jnp.float32),
        grid_spec=pl.GridSpec(
            grid=grid,
            in_specs=[
                # Full-extent blocks in the last two dims -> no tail tiles, no
                # masked stores; weights are constant-index (resident) blocks.
                pl.BlockSpec((bt, C, N), lambda b: (b, 0, 0)),
                pl.BlockSpec((C, Ch), lambda b: (0, 0)),
                pl.BlockSpec((Ch, C), lambda b: (0, 0)),
            ],
            out_specs=pl.BlockSpec((bt, C, N), lambda b: (b, 0, 0)),
        ),
        compiler_params=pltpu.CompilerParams(dimension_semantics=(sem,)),
        # Advisory: this call is bandwidth-bound (read x once, write out once).
        cost_estimate=pl.CostEstimate(
            flops=4 * B * C * Ch,
            transcendentals=B * C,
            bytes_accessed=2 * B * C * N * 4 + 2 * C * Ch * 4,
        ),
    )(x, w1, w2)

    return out.reshape(B, C, H, W)   # free reshape back to NCHW


# ----------------------------- pure-JAX reference ----------------------------

def reference_forward(x_nchw, w1, w2):
    y = jnp.mean(x_nchw.astype(jnp.float32), axis=(2, 3))          # [B, C]
    h = y @ w1
    h = jnp.where(h > 0, h, 0.2 * h)
    s = jax.nn.sigmoid(h @ w2)                                     # [B, C]
    return x_nchw * s[:, :, None, None]


# ----------------------------- main ------------------------------------------

if __name__ == "__main__":
    B, C, H, W = 2, 128, 16, 16       # channel=128, r=16 -> hidden = 8
    r = 16
    Ch = C // r

    key = jax.random.PRNGKey(0)
    kx, k1, k2 = jax.random.split(key, 3)
    x = jax.random.normal(kx, (B, C, H, W), jnp.float32)           # NCHW, like PyTorch
    # torch Linear(channel, channel//r, bias=False).weight is [C//r, C]; we pass
    # the transposed [in, out] form so the kernel matmuls are transpose-free.
    w1 = 0.1 * jax.random.normal(k1, (C, Ch), jnp.float32)
    w2 = 0.1 * jax.random.normal(k2, (Ch, C), jnp.float32)

    out = jax.block_until_ready(se_block_forward(x, w1, w2))
    ref = jax.block_until_ready(reference_forward(x, w1, w2))

    assert out.shape == (B, C, H, W), out.shape
    max_err = float(jnp.max(jnp.abs(out - ref)))
    assert max_err < 2e-2, f"mismatch vs reference: max abs err {max_err}"
    print("KERNEL_OK")
</pallas_src>

<mosaic_0001>
module attributes {stable_mosaic.version = 11 : i64} {
  func.func @_se_kernel(%arg0: i32, %arg1: memref<2x128x256xf32, #tpu.memory_space<vmem>>, %arg2: memref<128x8xf32, #tpu.memory_space<vmem>>, %arg3: memref<8x128xf32, #tpu.memory_space<vmem>>, %arg4: memref<2x128x256xf32, #tpu.memory_space<vmem>>) attributes {dimension_semantics = [#tpu.dimension_semantics<arbitrary>], iteration_bounds = array<i64: 1>, scalar_prefetch = 0 : i64, scratch_operands = 0 : i64, tpu.core_type = #tpu.core_type<tc>, window_params = [{transform_indices = @transform_0, window_bounds = array<i64: 2, 128, 256>}, {pipeline_mode = #tpu.pipeline_mode<synchronous>, transform_indices = @transform_1, window_bounds = array<i64: 128, 8>}, {pipeline_mode = #tpu.pipeline_mode<synchronous>, transform_indices = @transform_2, window_bounds = array<i64: 8, 128>}, {transform_indices = @transform_3, window_bounds = array<i64: 2, 128, 256>}]} {
    %c0 = arith.constant 0 : index
    %c0_0 = arith.constant 0 : index
    %c0_1 = arith.constant 0 : index
    %0 = vector.load %arg1[%c0, %c0_0, %c0_1] : memref<2x128x256xf32, #tpu.memory_space<vmem>>, vector<2x128x256xf32>
    %cst = arith.constant dense<0.000000e+00> : vector<2x128xf32>
    %1 = vector.multi_reduction <add>, %0, %cst [2] : vector<2x128x256xf32> to vector<2x128xf32>
    %cst_2 = arith.constant 2.560000e+02 : f32
    %2 = vector.broadcast %cst_2 : f32 to vector<2x128xf32>
    %3 = arith.divf %1, %2 : vector<2x128xf32>
    %c0_3 = arith.constant 0 : index
    %c0_4 = arith.constant 0 : index
    %4 = vector.load %arg2[%c0_3, %c0_4] : memref<128x8xf32, #tpu.memory_space<vmem>>, vector<128x8xf32>
    %cst_5 = arith.constant dense<0.000000e+00> : vector<2x8xf32>
    %5 = tpu.matmul %3, %4, %cst_5 {dimension_numbers = #tpu.dot_dimension_numbers<[1], [0], [0], [1], [0, 0, 1, 1], [], []>} : vector<2x128xf32>, vector<128x8xf32>, vector<2x8xf32> -> vector<2x8xf32>
    %cst_6 = arith.constant 0.000000e+00 : f32
    %6 = vector.broadcast %cst_6 : f32 to vector<2x8xf32>
    %7 = arith.cmpf ogt, %5, %6 : vector<2x8xf32>
    %cst_7 = arith.constant 2.000000e-01 : f32
    %8 = vector.broadcast %cst_7 : f32 to vector<2x8xf32>
    %9 = arith.mulf %8, %5 : vector<2x8xf32>
    %10 = arith.select %7, %5, %9 : vector<2x8xi1>, vector<2x8xf32>
    %c0_8 = arith.constant 0 : index
    %c0_9 = arith.constant 0 : index
    %11 = vector.load %arg3[%c0_8, %c0_9] : memref<8x128xf32, #tpu.memory_space<vmem>>, vector<8x128xf32>
    %cst_10 = arith.constant dense<0.000000e+00> : vector<2x128xf32>
    %12 = tpu.matmul %10, %11, %cst_10 {dimension_numbers = #tpu.dot_dimension_numbers<[1], [0], [0], [1], [0, 0, 1, 1], [], []>} : vector<2x8xf32>, vector<8x128xf32>, vector<2x128xf32> -> vector<2x128xf32>
    %cst_11 = arith.constant 0.000000e+00 : f32
    %13 = vector.broadcast %cst_11 : f32 to vector<2x128xf32>
    %14 = arith.subf %13, %12 : vector<2x128xf32>
    %15 = math.exp %14 : vector<2x128xf32>
    %cst_12 = arith.constant 1.000000e+00 : f32
    %16 = vector.broadcast %cst_12 : f32 to vector<2x128xf32>
    %17 = arith.addf %16, %15 : vector<2x128xf32>
    %18 = tpu.reciprocal %17 {approx = true} : vector<2x128xf32> -> vector<2x128xf32>
    %c0_13 = arith.constant 0 : index
    %c0_14 = arith.constant 0 : index
    %c0_15 = arith.constant 0 : index
    %19 = vector.load %arg1[%c0_13, %c0_14, %c0_15] : memref<2x128x256xf32, #tpu.memory_space<vmem>>, vector<2x128x256xf32>
    %20 = vector.shape_cast %18 : vector<2x128xf32> to vector<2x128x1xf32>
    %21 = vector.broadcast %20 : vector<2x128x1xf32> to vector<2x128x256xf32>
    %22 = arith.mulf %19, %21 : vector<2x128x256xf32>
    %c0_16 = arith.constant 0 : index
    %c0_17 = arith.constant 0 : index
    %c0_18 = arith.constant 0 : index
    %23 = vector.load %arg4[%c0_16, %c0_17, %c0_18] : memref<2x128x256xf32, #tpu.memory_space<vmem>>, vector<2x128x256xf32>
    tpu.vector_store %arg4[%c0_16, %c0_17, %c0_18], %22 {strides = array<i32>} : memref<2x128x256xf32, #tpu.memory_space<vmem>>, vector<2x128x256xf32>,
    return
  }
  func.func @transform_0(%arg0: i32) -> (i32, i32, i32) {
    %c0_i32 = arith.constant 0 : i32
    %c0_i32_0 = arith.constant 0 : i32
    %c0_i32_1 = arith.constant 0 : i32
    return %arg0, %c0_i32, %c0_i32_0 : i32, i32, i32
  }
  func.func @transform_1(%arg0: i32) -> (i32, i32) {
    %c0_i32 = arith.constant 0 : i32
    %c0_i32_0 = arith.constant 0 : i32
    %c0_i32_1 = arith.constant 0 : i32
    return %c0_i32, %c0_i32_0 : i32, i32
  }
  func.func @transform_2(%arg0: i32) -> (i32, i32) {
    %c0_i32 = arith.constant 0 : i32
    %c0_i32_0 = arith.constant 0 : i32
    %c0_i32_1 = arith.constant 0 : i32
    return %c0_i32, %c0_i32_0 : i32, i32
  }
  func.func @transform_3(%arg0: i32) -> (i32, i32, i32) {
    %c0_i32 = arith.constant 0 : i32
    %c0_i32_0 = arith.constant 0 : i32
    %c0_i32_1 = arith.constant 0 : i32
    return %arg0, %c0_i32, %c0_i32_0 : i32, i32, i32
  }
}

</mosaic_0001>

<bundles_post_ra>
// kernel: tpu_custom_call.1
= control target key start
LH: loop header
LB: loop body
LE: loop exit
PB: predicated region body
PF: predicated region fallthrough
CT: control target
= control target key end

     0   :  { %8 = vsyncpa [#allocation3], 0  ;;  %s1508_s0 = inlined_call_operand.hbm [shape: f32[2,128,256], index: 0, kind: input, shape index: {}]   ;;  %s1509_s1 = inlined_call_operand.vmem [shape: f32[128,8], index: 1, kind: input, shape index: {}]   ;;  %s1510_s2 = inlined_call_operand.vmem [shape: f32[8,128], index: 2, kind: input, shape index: {}]   ;;  %s1511_s3 = inlined_call_operand.hbm [shape: f32[2,128,256], index: 3, kind: output, shape index: {}]  }
   0x1   :  { %9 = vsyncpa [#allocation4], 0  ;;  %s1009_s12 = smov [#allocation2]  }
   0x2   :  { %s15_s13 = sshll.u32 %s1009_s12, 4  ;;  %s16_s13 = int_to_ptr.vmem [resolvable:$true] %s15_s13 }
   0x3   :  { %s973_s14 = scalar_lea.vmem %s16_s13, 8192  ;;  %p978_p1 = scmp.lt.s32.totalorder %s16_s13, %s16_s13 }
   0x4   :  { %p974_p0 = scmp.ne.s32.totalorder %s16_s13, %s973_s14  ;;  %p979_p2 = scmp.lt.s32.totalorder %s973_s14, %s973_s14 }
   0x6   :  { %p980_p3 = por %p979_p2, %p978_p1 }
   0x8   :  { %p981_p4 = pnand %p980_p3, %p974_p0 }
   0xa   :  { %984 = shalt.err (!%p981_p4)
}
   0xb   :  { %s1010_s15 = smov 256   ;;  %s1011_s16 = smov 16  }
   0xc   :  { %21 = dma.hbm_to_vmem [thread:$0]  %s1508_s0, 8192, %s16_s13, [#allocation3], %s1010_s15, %s1010_s15, %s1011_s16  }
   0xd   :  { %1005 = dma.done.wait [#allocation3], 8192  }
   0xe   :  { %1006 = vsyncadd [#allocation3], 4294959104  ;;  %v1041_v0 = vld [vmem:[#allocation2 + $0x100] sm:$0xff]  ;;  %v1043_v1 = vld [vmem:[#allocation2 + $0x108] sm:$0xff]  ;;  %vm1013_vm0 = vmmov 0   ;;  %vm281_vm1 = vcmask 130112  }
   0xf   :  { %1564 = vst [vmem:[#allocation8_spill] sm:$0xff] %v1041_v0  ;;  %1565 = vst [vmem:[#allocation9_spill] sm:$0xff] %v1043_v1  ;;  %v1045_v2 = vld [vmem:[#allocation2] sm:$0xff]  ;;  %v141_v3 = vadd.f32 %v1043_v1, %v1041_v0  ;;  %v1049_v4 = vld [vmem:[#allocation2 + $0x8] sm:$0xff]  ;;  %vm288_vm2 = vcmask 195712   ;;  %vm295_vm3 = vcmask 261312  }
  0x10   :  { %v1051_v5 = vld [vmem:[#allocation2 + $0x110] sm:$0xff]  ;;  %v1053_v6 = vld [vmem:[#allocation2 + $0x118] sm:$0xff]  ;;  %v93_v7 = vadd.f32 %v1049_v4, %v1045_v2  ;;  %v1065_v12 = vld [vmem:[#allocation2 + $0x120] sm:$0xff]  ;;  %vm302_vm4 = vcmask 326912   ;;  %vm309_vm5 = vcmask 392512   ;;  %vm316_vm6 = vcmask 458112  }
  0x11   :  { %1566 = vst [vmem:[#allocation10_spill] sm:$0xff] %v1051_v5  ;;  %1567 = vst [vmem:[#allocation11_spill] sm:$0xff] %v1053_v6  ;;  %v1057_v8 = vld [vmem:[#allocation2 + $0x10] sm:$0xff]  ;;  %v1059_v9 = vld [vmem:[#allocation2 + $0x18] sm:$0xff]  ;;  %142 = vadd.xlane.f32.xlu1 %v141_v3  ;;  %v144_v10 = vadd.f32 %v1053_v6, %v1051_v5  ;;  %vm323_vm7 = vcmask 523712   ;;  %vm330_vm8 = vcmask 589312  }
  0x12   :  { %94 = vadd.xlane.f32.xlu0 %v93_v7  ;;  %v96_v11 = vadd.f32 %v1059_v9, %v1057_v8  ;;  %1568 = vst [vmem:[#allocation12_spill] sm:$0xff] %v1065_v12  ;;  %v1067_v13 = vld [vmem:[#allocation2 + $0x128] sm:$0xff]  ;;  %v1069_v14 = vld [vmem:[#allocation2 + $0x20] sm:$0xff]  ;;  %v1077_v18 = vld [vmem:[#allocation2 + $0x130] sm:$0xff]  ;;  %vm337_vm9 = vcmask 654912   ;;  %vm344_vm10 = vcmask 720512  }
  0x13   :  { %1569 = vst [vmem:[#allocation13_spill] sm:$0xff] %v1067_v13  ;;  %v1071_v15 = vld [vmem:[#allocation2 + $0x28] sm:$0xff]  ;;  %v147_v16 = vadd.f32 %v1067_v13, %v1065_v12  ;;  %1570 = vst [vmem:[#allocation14_spill] sm:$0xff] %v1077_v18  ;;  %v1079_v19 = vld [vmem:[#allocation2 + $0x138] sm:$0xff]  ;;  %vm351_vm11 = vcmask 786112   ;;  %vm358_vm12 = vcmask 851712  }
  0x14   :  { %v99_v17 = vadd.f32 %v1071_v15, %v1069_v14  ;;  %1571 = vst [vmem:[#allocation15_spill] sm:$0xff] %v1079_v19  ;;  %v1081_v20 = vld [vmem:[#allocation2 + $0x30] sm:$0xff]  ;;  %v1083_v21 = vld [vmem:[#allocation2 + $0x38] sm:$0xff]  ;;  %v150_v22 = vadd.f32 %v1079_v19, %v1077_v18  ;;  %v1089_v24 = vld [vmem:[#allocation2 + $0x140] sm:$0xff]  ;;  %vm365_vm13 = vcmask 917312   ;;  %vm372_vm14 = vcmask 982912  }
  0x15   :  { %145 = vadd.xlane.f32.xlu1 %v144_v10  ;;  %v102_v23 = vadd.f32 %v1083_v21, %v1081_v20  ;;  %1572 = vst [vmem:[#allocation16_spill] sm:$0xff] %v1089_v24  ;;  %v1091_v25 = vld [vmem:[#allocation2 + $0x148] sm:$0xff]  ;;  %v1093_v26 = vld [vmem:[#allocation2 + $0x40] sm:$0xff]  ;;  %v1101_v30 = vld [vmem:[#allocation2 + $0x150] sm:$0xff]  ;;  %vm379_vm15 = vcmask 1048512  }
  0x16   :  { %97 = vadd.xlane.f32.xlu0 %v96_v11  ;;  %1573 = vst [vmem:[#allocation17_spill] sm:$0xff] %v1091_v25  ;;  %v1095_v27 = vld [vmem:[#allocation2 + $0x48] sm:$0xff]  ;;  %v153_v28 = vadd.f32 %v1091_v25, %v1089_v24  ;;  %1574 = vst [vmem:[#allocation18_spill] sm:$0xff] %v1101_v30  ;;  %v1103_v31 = vld [vmem:[#allocation2 + $0x158] sm:$0xff] }
  0x17   :  { %v105_v29 = vadd.f32 %v1095_v27, %v1093_v26  ;;  %1575 = vst [vmem:[#allocation19_spill] sm:$0xff] %v1103_v31  ;;  %v1105_v32 = vld [vmem:[#allocation2 + $0x50] sm:$0xff]  ;;  %v1107_v33 = vld [vmem:[#allocation2 + $0x58] sm:$0xff]  ;;  %v156_v34 = vadd.f32 %v1103_v31, %v1101_v30  ;;  %v1113_v36 = vld [vmem:[#allocation2 + $0x160] sm:$0xff] }
  0x18   :  { %1576 = vst [vmem:[#allocation20_spill] sm:$0xff] %v1105_v32  ;;  %1577 = vst [vmem:[#allocation21_spill] sm:$0xff] %v1107_v33  ;;  %v108_v35 = vadd.f32 %v1107_v33, %v1105_v32  ;;  %v1115_v37 = vld [vmem:[#allocation2 + $0x168] sm:$0xff]  ;;  %v1117_v38 = vld [vmem:[#allocation2 + $0x60] sm:$0xff] }
  0x19   :  { %148 = vadd.xlane.f32.xlu1 %v147_v16  ;;  %1578 = vst [vmem:[#allocation22_spill] sm:$0xff] %v1113_v36  ;;  %1579 = vst [vmem:[#allocation23_spill] sm:$0xff] %v1115_v37  ;;  %v1119_v39 = vld [vmem:[#allocation2 + $0x68] sm:$0xff]  ;;  %v159_v40 = vadd.f32 %v1115_v37, %v1113_v36  ;;  %v1125_v42 = vld [vmem:[#allocation2 + $0x170] sm:$0xff] }
  0x1a   :  { %100 = vadd.xlane.f32.xlu0 %v99_v17  ;;  %v111_v41 = vadd.f32 %v1119_v39, %v1117_v38  ;;  %1580 = vst [vmem:[#allocation24_spill] sm:$0xff] %v1125_v42  ;;  %v1127_v43 = vld [vmem:[#allocation2 + $0x178] sm:$0xff]  ;;  %v1129_v44 = vld [vmem:[#allocation2 + $0x70] sm:$0xff]  ;;  %v1137_v48 = vld [vmem:[#allocation2 + $0x180] sm:$0xff] }
  0x1b   :  { %1581 = vst [vmem:[#allocation25_spill] sm:$0xff] %v1127_v43  ;;  %1582 = vst [vmem:[#allocation26_spill] sm:$0xff] %v1129_v44  ;;  %v1131_v45 = vld [vmem:[#allocation2 + $0x78] sm:$0xff]  ;;  %v162_v46 = vadd.f32 %v1127_v43, %v1125_v42  ;;  %v1139_v49 = vld [vmem:[#allocation2 + $0x188] sm:$0xff] }
  0x1c   :  { %1583 = vst [vmem:[#allocation27_spill] sm:$0xff] %v1131_v45  ;;  %v114_v47 = vadd.f32 %v1131_v45, %v1129_v44  ;;  %1584 = vst [vmem:[#allocation28_spill] sm:$0xff] %v1137_v48  ;;  %v1141_v50 = vld [vmem:[#allocation2 + $0x80] sm:$0xff]  ;;  %v1143_v51 = vld [vmem:[#allocation2 + $0x88] sm:$0xff]  ;;  %v165_v52 = vadd.f32 %v1139_v49, %v1137_v48 }
  0x1d   :  { %151 = vadd.xlane.f32.xlu1 %v150_v22  ;;  %1585 = vst [vmem:[#allocation29_spill] sm:$0xff] %v1139_v49  ;;  %1586 = vst [vmem:[#allocation30_spill] sm:$0xff] %v1141_v50  ;;  %v117_v53 = vadd.f32 %v1143_v51, %v1141_v50  ;;  %v1149_v54 = vld [vmem:[#allocation2 + $0x190] sm:$0xff]  ;;  %v1151_v55 = vld [vmem:[#allocation2 + $0x198] sm:$0xff]  ;;  %v270_v49 = vlaneseq }
  0x1e   :  { %103 = vadd.xlane.f32.xlu0 %v102_v23  ;;  %1587 = vst [vmem:[#allocation31_spill] sm:$0xff] %v1143_v51  ;;  %1588 = vst [vmem:[#allocation32_spill] sm:$0xff] %v1149_v54  ;;  %v1153_v56 = vld [vmem:[#allocation2 + $0x90] sm:$0xff]  ;;  %v1155_v57 = vld [vmem:[#allocation2 + $0x98] sm:$0xff]  ;;  %v168_v58 = vadd.f32 %v1151_v55, %v1149_v54 }
  0x1f   :  { %1589 = vst [vmem:[#allocation33_spill] sm:$0xff] %v1151_v55  ;;  %1590 = vst [vmem:[#allocation34_spill] sm:$0xff] %v1153_v56  ;;  %v120_v59 = vadd.f32 %v1155_v57, %v1153_v56  ;;  %v1161_v60 = vld [vmem:[#allocation2 + $0x1a0] sm:$0xff]  ;;  %v1163_v61 = vld [vmem:[#allocation2 + $0x1a8] sm:$0xff]  ;;  %v271_v48 = vand.u32 127, %v270_v49  ;;  %v1310_v31 = vshrl.u32 %v270_v49, 7 }
  0x20   :  { %1591 = vst [vmem:[#allocation35_spill] sm:$0xff] %v1155_v57  ;;  %1592 = vst [vmem:[#allocation36_spill] sm:$0xff] %v1161_v60  ;;  %v1165_v62 = vld [vmem:[#allocation2 + $0xa0] sm:$0xff]  ;;  %v1167_v63 = vld [vmem:[#allocation2 + $0xa8] sm:$0xff]  ;;  %v171_v3 = vadd.f32 %v1163_v61, %v1161_v60 }
  0x21   :  { %154 = vadd.xlane.f32.xlu1 %v153_v28  ;;  %1593 = vst [vmem:[#allocation37_spill] sm:$0xff] %v1163_v61  ;;  %1594 = vst [vmem:[#allocation38_spill] sm:$0xff] %v1165_v62  ;;  %v123_v7 = vadd.f32 %v1167_v63, %v1165_v62  ;;  %v1173_v10 = vld [vmem:[#allocation2 + $0x1b0] sm:$0xff]  ;;  %v1175_v11 = vld [vmem:[#allocation2 + $0x1b8] sm:$0xff]  ;;  %v276_v30 = vadd.s32 4294967288, %v271_v48  ;;  %v283_v37 = vadd.s32 4294967280, %v271_v48  ;;  %v1317_v13 = vsub.s32 %v271_v48, %v1310_v31 }
  0x22   :  { %106 = vadd.xlane.f32.xlu0 %v105_v29  ;;  %1595 = vst [vmem:[#allocation39_spill] sm:$0xff] %v1167_v63  ;;  %1596 = vst [vmem:[#allocation40_spill] sm:$0xff] %v1173_v10  ;;  %v1177_v16 = vld [vmem:[#allocation2 + $0xb0] sm:$0xff]  ;;  %v1179_v17 = vld [vmem:[#allocation2 + $0xb8] sm:$0xff]  ;;  %v174_v22 = vadd.f32 %v1175_v11, %v1173_v10  ;;  %v290_v19 = vadd.s32 4294967272, %v271_v48  ;;  %v297_v18 = vadd.s32 4294967264, %v271_v48 }
  0x23   :  { %1597 = vst [vmem:[#allocation41_spill] sm:$0xff] %v1175_v11  ;;  %1598 = vst [vmem:[#allocation42_spill] sm:$0xff] %v1177_v16  ;;  %v126_v23 = vadd.f32 %v1179_v17, %v1177_v16  ;;  %v1185_v28 = vld [vmem:[#allocation2 + $0x1c0] sm:$0xff]  ;;  %v1187_v29 = vld [vmem:[#allocation2 + $0x1c8] sm:$0xff]  ;;  %v304_v24 = vadd.s32 4294967256, %v271_v48  ;;  %v311_v6 = vadd.s32 4294967248, %v271_v48  ;;  %v279_v49 = vsub.s32 %v276_v30, %v1310_v31 }
  0x24   :  { %1599 = vst [vmem:[#allocation43_spill] sm:$0xff] %v1179_v17  ;;  %1600 = vst [vmem:[#allocation44_spill] sm:$0xff] %v1185_v28  ;;  %v235_v11 = vld [vmem:[%s1509_s1 + $0x68] sm:$0xff]  ;;  %v1226_v10 = vld [vmem:[#allocation2 + $0xe0] sm:$0xff]  ;;  %v318_v5 = vadd.s32 4294967240, %v271_v48  ;;  %v325_v12 = vadd.s32 4294967232, %v271_v48  ;;  %v1321_v1 = vsub.s32 %v283_v37, %v1310_v31 }
  0x25   :  { %157 = vadd.xlane.f32.xlu1 %v156_v34  ;;  %1601 = vst [vmem:[#allocation45_spill] sm:$0xff] %v1187_v29  ;;  %v1189_v34 = vld [vmem:[#allocation2 + $0xc0] sm:$0xff]  ;;  %1610 = vst [vmem:[#allocation54_spill] sm:$0xff] %v1226_v10  ;;  %v353_v17 = vadd.s32 4294967200, %v271_v48  ;;  %v1334_v30 = vsub.s32 %v304_v24, %v1310_v31  ;;  %v1337_v37 = vsub.s32 %v311_v6, %v1310_v31 }
  0x26   :  { %109 = vadd.xlane.f32.xlu0 %v108_v35  ;;  %1602 = vst [vmem:[#allocation46_spill] sm:$0xff] %v1189_v34  ;;  %v1191_v35 = vld [vmem:[#allocation2 + $0xc8] sm:$0xff]  ;;  %v1340_v16 = vsub.s32 %v318_v5, %v1310_v31  ;;  %v367_v5 = vadd.s32 4294967184, %v271_v48 }
  0x27   :  { %1603 = vst [vmem:[#allocation47_spill] sm:$0xff] %v1191_v35 }
  0x29   :  { %160 = vadd.xlane.f32.xlu1 %v159_v40  ;;  %v177_v40 = vadd.f32 %v1187_v29, %v1185_v28  ;;  %v1240_v29 = vld [vmem:[#allocation2 + $0x1f8] sm:$0xff]  ;;  %v1246_v28 = vld [vmem:[#allocation2 + $0xf0] sm:$0xff] }
  0x2a   :  { %112 = vadd.xlane.f32.xlu0 %v111_v41  ;;  %v129_v41 = vadd.f32 %v1191_v35, %v1189_v34  ;;  %1613 = vst [vmem:[#allocation57_spill] sm:$0xff] %v1240_v29  ;;  %1614 = vst [vmem:[#allocation58_spill] sm:$0xff] %v1246_v28  ;;  %v360_v35 = vadd.s32 4294967192, %v271_v48 }
  0x2d   :  { %163 = vadd.xlane.f32.xlu1 %v162_v46  ;;  %v1197_v46 = vld [vmem:[#allocation2 + $0x1d0] sm:$0xff] }
  0x2e   :  { %115 = vadd.xlane.f32.xlu0 %v114_v47  ;;  %1604 = vst [vmem:[#allocation48_spill] sm:$0xff] %v1197_v46  ;;  %v1199_v47 = vld [vmem:[#allocation2 + $0x1d8] sm:$0xff] }
  0x2f   :  { %1605 = vst [vmem:[#allocation49_spill] sm:$0xff] %v1199_v47 }
  0x31   :  { %166 = vadd.xlane.f32.xlu1 %v165_v52  ;;  %v1012_v52 = vmov 0.0  }
  0x32   :  { %118 = vadd.xlane.f32.xlu0 %v117_v53  ;;  %915 = vmatprep.subr.mxu0 %v1012_v52  ;;  %v237_v53 = vld [vmem:[%s1509_s1 + $0x78] sm:$0xff] }
  0x33   :  { %916 = vmatpush3.msra.mxu0 %v237_v53  ;;  %950 = vmatprep.subr.mxu1 %v1012_v52  ;;  %v1220_v53 = vld [vmem:[#allocation2 + $0x1e8] sm:$0xff] }
  0x34   :  { %917 = vmatprep.subr.mxu0 %v1012_v52  ;;  %1609 = vst [vmem:[#allocation53_spill] sm:$0xff] %v1220_v53  ;;  %947 = vmatprep.mubr.msk.f32.mxu0 %vm1013_vm0, %v1012_v52 }
  0x35   :  { %169 = vadd.xlane.f32.xlu1 %v168_v58  ;;  %v1205_v58 = vld [vmem:[#allocation2 + $0xd0] sm:$0xff]  ;;  %952 = vmatprep.mubr.msk.f32.mxu1 %vm1013_vm0, %v1012_v52  ;;  %vm460_vm0 = vcmask 1041409  }
  0x36   :  { %121 = vadd.xlane.f32.xlu0 %v120_v59  ;;  %1606 = vst [vmem:[#allocation50_spill] sm:$0xff] %v1205_v58  ;;  %v1207_v59 = vld [vmem:[#allocation2 + $0xd8] sm:$0xff] }
  0x37   :  { %1607 = vst [vmem:[#allocation51_spill] sm:$0xff] %v1207_v59 }
  0x39   :  { %172 = vadd.xlane.f32.xlu1 %v171_v3  ;;  %v236_v3 = vld [vmem:[%s1509_s1 + $0x70] sm:$0xff] }
  0x3a   :  { %124 = vadd.xlane.f32.xlu0 %v123_v7  ;;  %v180_v7 = vadd.f32 %v1199_v47, %v1197_v46  ;;  %918 = vmatpush3.msra.mxu0 %v236_v3  ;;  %v1238_v46 = vld [vmem:[#allocation2 + $0x1f0] sm:$0xff] }
  0x3b   :  { %919 = vmatprep.subr.mxu0 %v1012_v52  ;;  %1612 = vst [vmem:[#allocation56_spill] sm:$0xff] %v1238_v46 }
  0x3c   :  { %920 = vmatpush3.msra.mxu0 %v235_v11  ;;  %v233_v11 = vld [vmem:[%s1509_s1 + $0x58] sm:$0xff] }
  0x3d   :  { %175 = vadd.xlane.f32.xlu1 %v174_v22  ;;  %v132_v22 = vadd.f32 %v1207_v59, %v1205_v58  ;;  %921 = vmatprep.subr.mxu0 %v1012_v52  ;;  %v346_v59 = vadd.s32 4294967208, %v271_v48  ;;  %v1326_v58 = vsub.s32 %v290_v19, %v1310_v31  ;;  %v1343_v19 = vsub.s32 %v325_v12, %v1310_v31 }
  0x3e   :  { %127 = vadd.xlane.f32.xlu0 %v126_v23  ;;  %v1218_v23 = vld [vmem:[#allocation2 + $0x1e0] sm:$0xff]  ;;  %v1355_v12 = vsub.s32 %v353_v17, %v1310_v31  ;;  %v1363_v17 = vsub.s32 %v367_v5, %v1310_v31 }
  0x3f   :  { %1608 = vst [vmem:[#allocation52_spill] sm:$0xff] %v1218_v23  ;;  %v183_v3 = vadd.f32 %v1220_v53, %v1218_v23  ;;  %v1352_v63 = vsub.s32 %v346_v59, %v1310_v31  ;;  %v374_v59 = vadd.s32 4294967176, %v271_v48 }
  0x41   :  { %178 = vadd.xlane.f32.xlu1 %v177_v40  ;;  %v1228_v40 = vld [vmem:[#allocation2 + $0xe8] sm:$0xff] }
  0x42   :  { %130 = vadd.xlane.f32.xlu0 %v129_v41  ;;  %1611 = vst [vmem:[#allocation55_spill] sm:$0xff] %v1228_v40  ;;  %v234_v41 = vld [vmem:[%s1509_s1 + $0x60] sm:$0xff]  ;;  %v135_v47 = vadd.f32 %v1228_v40, %v1226_v10  ;;  %v1329_v40 = vsub.s32 %v297_v18, %v1310_v31 }
  0x43   :  { %922 = vmatpush3.msra.mxu0 %v234_v41  ;;  %v186_v41 = vadd.f32 %v1240_v29, %v1238_v46 }
  0x44   :  { %923 = vmatprep.subr.mxu0 %v1012_v52 }
  0x45   :  { %181 = vadd.xlane.f32.xlu1 %v180_v7  ;;  %v1248_v7 = vld [vmem:[#allocation2 + $0xf8] sm:$0xff]  ;;  %924 = vmatpush3.msra.mxu0 %v233_v11  ;;  %v231_v11 = vld [vmem:[%s1509_s1 + $0x48] sm:$0xff] }
  0x46   :  { %133 = vadd.xlane.f32.xlu0 %v132_v22  ;;  %1615 = vst [vmem:[#allocation59_spill] sm:$0xff] %v1248_v7  ;;  %925 = vmatprep.subr.mxu0 %v1012_v52  ;;  %v232_v22 = vld [vmem:[%s1509_s1 + $0x50] sm:$0xff]  ;;  %v138_v53 = vadd.f32 %v1248_v7, %v1246_v28  ;;  %v332_v7 = vadd.s32 4294967224, %v271_v48  ;;  %v339_v28 = vadd.s32 4294967216, %v271_v48 }
  0x47   :  { %926 = vmatpush3.msra.mxu0 %v232_v22  ;;  %v228_v22 = vld [vmem:[%s1509_s1 + $0x30] sm:$0xff] }
  0x48   :  { %927 = vmatprep.subr.mxu0 %v1012_v52  ;;  %v1346_v18 = vsub.s32 %v332_v7, %v1310_v31  ;;  %v1349_v57 = vsub.s32 %v339_v28, %v1310_v31  ;;  %v1358_v28 = vsub.s32 %v360_v35, %v1310_v31 }
  0x49   :  { %184 = vadd.xlane.f32.xlu1 %v183_v3  ;;  %928 = vmatpush3.msra.mxu0 %v231_v11  ;;  %v230_v3 = vld [vmem:[%s1509_s1 + $0x40] sm:$0xff]  ;;  %v225_v11 = vld [vmem:[%s1509_s1 + $0x18] sm:$0xff] }
  0x4a   :  { %136 = vadd.xlane.f32.xlu0 %v135_v47  ;;  %929 = vmatprep.subr.mxu0 %v1012_v52  ;;  %v229_v47 = vld [vmem:[%s1509_s1 + $0x38] sm:$0xff] }
  0x4b   :  { %930 = vmatpush3.msra.mxu0 %v230_v3  ;;  %v224_v3 = vld [vmem:[%s1509_s1 + $0x10] sm:$0xff] }
  0x4c   :  { %931 = vmatprep.subr.mxu0 %v1012_v52 }
  0x4d   :  { %187 = vadd.xlane.f32.xlu1 %v186_v41  ;;  %932 = vmatpush3.msra.mxu0 %v229_v47  ;;  %v226_v41 = vld [vmem:[%s1509_s1 + $0x20] sm:$0xff]  ;;  %v223_v47 = vld [vmem:[%s1509_s1 + $0x8] sm:$0xff] }
  0x4e   :  { %139 = vadd.xlane.f32.xlu0 %v138_v53  ;;  %933 = vmatprep.subr.mxu0 %v1012_v52  ;;  %v227_v53 = vld [vmem:[%s1509_s1 + $0x28] sm:$0xff] }
  0x4f   :  { %934 = vmatpush3.msra.mxu0 %v228_v22  ;;  %v222_v22 = vld [vmem:[%s1509_s1] sm:$0xff] }
  0x50   :  { %935 = vmatprep.subr.mxu0 %v1012_v52 }
  0x51   :  { %936 = vmatpush3.msra.mxu0 %v227_v53 }
  0x52   :  { %937 = vmatprep.subr.mxu0 %v1012_v52 }
  0x53   :  { %938 = vmatpush3.msra.mxu0 %v226_v41 }
  0x54   :  { %939 = vmatprep.subr.mxu0 %v1012_v52 }
  0x55   :  { %940 = vmatpush3.msra.mxu0 %v225_v11 }
  0x56   :  { %941 = vmatprep.subr.mxu0 %v1012_v52 }
  0x57   :  { %942 = vmatpush3.msra.mxu0 %v224_v3 }
  0x58   :  { %943 = vmatprep.subr.mxu0 %v1012_v52 }
  0x59   :  { %944 = vmatpush3.msra.mxu0 %v223_v47 }
  0x5a   :  { %945 = vmatprep.subr.mxu0 %v1012_v52 }
  0x5b   :  { %946 = vmatpush3.msra.mxu0 %v222_v22 }
  0x9a   :  { %v143_v53 = vpop.xlane.xlu1 %142 }
  0x9b   :  { %v95_v41 = vpop.xlane.xlu0 %94  ;;  %v206_v62 = vmul.f32 0.00390625, %v143_v53 }
  0x9c   :  { %v190_v7 = vmul.f32 0.00390625, %v95_v41 }
  0x9e   :  { %v146_v11 = vpop.xlane.xlu1 %145  ;;  %v275_v48 = vrot.slane %v190_v7, %v1317_v13 }
  0x9f   :  { %v98_v3 = vpop.xlane.xlu0 %97  ;;  %v207_v34 = vmul.f32 0.00390625, %v146_v11 }
  0xa0   :  { %v191_v24 = vmul.f32 0.00390625, %v98_v3 }
  0xa2   :  { %v149_v29 = vpop.xlane.xlu1 %148  ;;  %v280_v32 = vrot.slane %v191_v24, %v279_v49 }
  0xa3   :  { %v101_v46 = vpop.xlane.xlu0 %100  ;;  %v208_v56 = vmul.f32 0.00390625, %v149_v29  ;;  %v388_v29 = vrot.slane %v207_v34, %v279_v49 }
  0xa4   :  { %v192_v11 = vmul.f32 0.00390625, %v101_v46 }
  0xa5   :  { %v393_v53 = vrot.slane %v208_v56, %v1321_v1 }
  0xa6   :  { %v152_v23 = vpop.xlane.xlu1 %151 }
  0xa7   :  { %v104_v55 = vpop.xlane.xlu0 %103  ;;  %v209_v45 = vmul.f32 0.00390625, %v152_v23 }
  0xa8   :  { %v193_v51 = vmul.f32 0.00390625, %v104_v55  ;;  %v384_v55 = vrot.slane %v206_v62, %v1317_v13 }
  0xa9   :  { %v398_v35 = vrot.slane %v209_v45, %v1326_v58  ;;  %v1377_v45 = vsub.s32 %v374_v59, %v1310_v31 }
  0xaa   :  { %v155_v54 = vpop.xlane.xlu1 %154  ;;  %v294_v56 = vrot.slane %v193_v51, %v1326_v58 }
  0xab   :  { %v107_v61 = vpop.xlane.xlu0 %106  ;;  %v210_v50 = vmul.f32 0.00390625, %v155_v54  ;;  %v287_v54 = vrot.slane %v192_v11, %v1321_v1 }
  0xac   :  { %v194_v3 = vmul.f32 0.00390625, %v107_v61 }
  0xad   :  { %v403_v61 = vrot.slane %v210_v50, %v1329_v40 }
  0xae   :  { %v158_v60 = vpop.xlane.xlu1 %157  ;;  %v301_v62 = vrot.slane %v194_v3, %v1329_v40 }
  0xaf   :  { %v1300_v47 = vpop.xlane.xlu0 %109  ;;  %v211_v33 = vmul.f32 0.00390625, %v158_v60 }
  0xb0   :  { %v195_v46 = vmul.f32 0.00390625, %v1300_v47  ;;  %v389_v47 = vsel %vm281_vm1, %v388_v29, %v384_v55 }
  0xb1   :  { %v408_v1 = vrot.slane %v211_v33, %v1334_v30  ;;  %v394_v13 = vsel %vm288_vm2, %v393_v53, %v389_v47 }
  0xb2   :  { %v1302_v43 = vpop.xlane.xlu1 %160  ;;  %v308_v51 = vrot.slane %v195_v46, %v1334_v30  ;;  %v399_v40 = vsel %vm295_vm3, %v398_v35, %v394_v13 }
  0xb3   :  { %v1304_v42 = vpop.xlane.xlu0 %112  ;;  %v212_v34 = vmul.f32 0.00390625, %v1302_v43  ;;  %v282_v43 = vsel %vm281_vm1, %v280_v32, %v275_v48  ;;  %v404_v5 = vsel %vm302_vm4, %v403_v61, %v399_v40 }
  0xb4   :  { %v196_v41 = vmul.f32 0.00390625, %v1304_v42  ;;  %v289_v58 = vsel %vm288_vm2, %v287_v54, %v282_v43  ;;  %v409_v7 = vsel %vm309_vm5, %v408_v1, %v404_v5  ;;  %vm537_vm2 = vcmask 64512  }
  0xb5   :  { %v413_v33 = vrot.slane %v212_v34, %v1337_v37  ;;  %v296_v32 = vsel %vm295_vm3, %v294_v56, %v289_v58 }
  0xb6   :  { %v1306_v52 = vpop.xlane.xlu1 %163  ;;  %v315_v30 = vrot.slane %v196_v41, %v1337_v37  ;;  %v303_v11 = vsel %vm302_vm4, %v301_v62, %v296_v32 }
  0xb7   :  { %v1308_v22 = vpop.xlane.xlu0 %115  ;;  %v213_v50 = vmul.f32 0.00390625, %v1306_v52 }
  0xb8   :  { %v197_v49 = vmul.f32 0.00390625, %v1308_v22  ;;  %v310_v22 = vsel %vm309_vm5, %v308_v51, %v303_v11 }
  0xb9   :  { %v418_v59 = vrot.slane %v213_v50, %v1340_v16 }
  0xba   :  { %v1312_v36 = vpop.xlane.xlu1 %166  ;;  %v322_v55 = vrot.slane %v197_v49, %v1340_v16 }
  0xbb   :  { %v1314_v25 = vpop.xlane.xlu0 %118  ;;  %v214_v52 = vmul.f32 0.00390625, %v1312_v36  ;;  %v414_v36 = vsel %vm316_vm6, %v413_v33, %v409_v7 }
  0xbc   :  { %v198_v29 = vmul.f32 0.00390625, %v1314_v25  ;;  %v419_v47 = vsel %vm323_vm7, %v418_v59, %v414_v36 }
  0xbd   :  { %v423_v25 = vrot.slane %v214_v52, %v1343_v19 }
  0xbe   :  { %v1323_v0 = vpop.xlane.xlu1 %169  ;;  %v329_v61 = vrot.slane %v198_v29, %v1343_v19 }
  0xbf   :  { %v1331_v10 = vpop.xlane.xlu0 %121  ;;  %v215_v3 = vmul.f32 0.00390625, %v1323_v0  ;;  %v317_v0 = vsel %vm316_vm6, %v315_v30, %v310_v22  ;;  %v424_v51 = vsel %vm330_vm8, %v423_v25, %v419_v47 }
  0xc0   :  { %v199_v53 = vmul.f32 0.00390625, %v1331_v10  ;;  %v324_v1 = vsel %vm323_vm7, %v322_v55, %v317_v0 }
  0xc1   :  { %v428_v10 = vrot.slane %v215_v3, %v1346_v18 }
  0xc2   :  { %v173_v6 = vpop.xlane.xlu1 %172  ;;  %v336_v16 = vrot.slane %v199_v53, %v1346_v18  ;;  %v331_v18 = vsel %vm330_vm8, %v329_v61, %v324_v1 }
  0xc3   :  { %v125_v44 = vpop.xlane.xlu0 %124  ;;  %v216_v46 = vmul.f32 0.00390625, %v173_v6  ;;  %v429_v40 = vsel %vm337_vm9, %v428_v10, %v424_v51 }
  0xc4   :  { %v200_v54 = vmul.f32 0.00390625, %v125_v44 }
  0xc5   :  { %v433_v44 = vrot.slane %v216_v46, %v1349_v57 }
  0xc6   :  { %v176_v23 = vpop.xlane.xlu1 %175  ;;  %v343_v43 = vrot.slane %v200_v54, %v1349_v57  ;;  %v338_v57 = vsel %vm337_vm9, %v336_v16, %v331_v18  ;;  %v618_v16 = vsub.s32 0, %v1310_v31 }
  0xc7   :  { %v128_v60 = vpop.xlane.xlu0 %127  ;;  %v217_v35 = vmul.f32 0.00390625, %v176_v23 }
  0xc8   :  { %v201_v48 = vmul.f32 0.00390625, %v128_v60  ;;  %v345_v30 = vsel %vm344_vm10, %v343_v43, %v338_v57 }
  0xc9   :  { %v438_v60 = vrot.slane %v217_v35, %v1352_v63 }
  0xca   :  { %v179_v42 = vpop.xlane.xlu1 %178  ;;  %v350_v50 = vrot.slane %v201_v48, %v1352_v63 }
  0xcb   :  { %v131_v24 = vpop.xlane.xlu0 %130  ;;  %v218_v56 = vmul.f32 0.00390625, %v179_v42 }
  0xcc   :  { %v202_v6 = vmul.f32 0.00390625, %v131_v24  ;;  %v434_v24 = vsel %vm344_vm10, %v433_v44, %v429_v40 }
  0xcd   :  { %v443_v42 = vrot.slane %v218_v56, %v1355_v12  ;;  %v439_v52 = vsel %vm351_vm11, %v438_v60, %v434_v24  ;;  %v1617_v24 = vld [vmem:[#allocation21_spill] sm:$0xff] }
  0xce   :  { %v182_v37 = vpop.xlane.xlu1 %181  ;;  %v357_v33 = vrot.slane %v202_v6, %v1355_v12  ;;  %v352_v12 = vsel %vm351_vm11, %v350_v50, %v345_v30  ;;  %v1619_v30 = vld [vmem:[#allocation31_spill] sm:$0xff] }
  0xcf   :  { %v134_v34 = vpop.xlane.xlu0 %133  ;;  %v219_v41 = vmul.f32 0.00390625, %v182_v37  ;;  %v444_v3 = vsel %vm358_vm12, %v443_v42, %v439_v52 }
  0xd0   :  { %v203_v23 = vmul.f32 0.00390625, %v134_v34  ;;  %v359_v59 = vsel %vm358_vm12, %v357_v33, %v352_v12  ;;  %v536_v34 = vld [vmem:[%s1510_s2] sm:$0xff]  ;;  %s1014_s2 = smov [#allocation5]  }
  0xd1   :  { %v448_v49 = vrot.slane %v219_v41, %v1358_v28  ;;  %951 = vmatpush3.msra.mxu1 %v536_v34  ;;  %s883_s25 = sshll.u32 %s1014_s2, 4  ;;  %s884_s25 = int_to_ptr.vmem [resolvable:$true] %s883_s25 }
  0xd2   :  { %v185_v62 = vpop.xlane.xlu1 %184  ;;  %v364_v32 = vrot.slane %v203_v23, %v1358_v28  ;;  %s985_s26 = scalar_lea.vmem %s884_s25, 8192  ;;  %p990_p6 = scmp.lt.s32.totalorder %s884_s25, %s884_s25 }
  0xd3   :  { %v220_v13 = vmul.f32 0.00390625, %v185_v62  ;;  %v137_v19 = vpop.xlane.xlu0 %136  ;;  %v449_v28 = vsel %vm365_vm13, %v448_v49, %v444_v3  ;;  %v685_v62 = vsub.s32 1, %v1310_v31  ;;  %v1623_v3 = vld [vmem:[#allocation39_spill] sm:$0xff]  ;;  %p986_p5 = scmp.ne.s32.totalorder %s884_s25, %s985_s26  ;;  %p991_p7 = scmp.lt.s32.totalorder %s985_s26, %s985_s26 }
  0xd4   :  { %v204_v58 = vmul.f32 0.00390625, %v137_v19  ;;  %v366_v46 = vsel %vm365_vm13, %v364_v32, %v359_v59 }
  0xd5   :  { %v453_v5 = vrot.slane %v220_v13, %v1363_v17  ;;  %p992_p8 = por %p991_p7, %p990_p6 }
  0xd6   :  { %v188_v63 = vpop.xlane.xlu1 %187  ;;  %v371_v11 = vrot.slane %v204_v58, %v1363_v17 }
  0xd7   :  { %v221_v7 = vmul.f32 0.00390625, %v188_v63  ;;  %v140_v29 = vpop.xlane.xlu0 %139  ;;  %v454_v17 = vsel %vm372_vm14, %v453_v5, %v449_v28  ;;  %v1618_v5 = vld [vmem:[#allocation30_spill] sm:$0xff]  ;;  %p993_p9 = pnand %p992_p8, %p986_p5 }
  0xd8   :  { %v205_v22 = vmul.f32 0.00390625, %v140_v29  ;;  %v373_v36 = vsel %vm372_vm14, %v371_v11, %v366_v46  ;;  %v1621_v11 = vld [vmem:[#allocation27_spill] sm:$0xff]  ;;  %v1622_v29 = vld [vmem:[#allocation38_spill] sm:$0xff] }
  0xd9   :  { %v458_v53 = vrot.slane %v221_v7, %v1377_v45 }
  0xda   :  { %v378_v37 = vrot.slane %v205_v22, %v1377_v45 }
  0xdb   :  { %v459_v55 = vsel %vm379_vm15, %v458_v53, %v454_v17  ;;  %v1624_v53 = vld [vmem:[#allocation34_spill] sm:$0xff] }
  0xdc   :  { %v380_v54 = vsel %vm379_vm15, %v378_v37, %v373_v36  ;;  %v1625_v37 = vld [vmem:[#allocation35_spill] sm:$0xff]  ;;  %v1626_v36 = vld [vmem:[#allocation46_spill] sm:$0xff] }
  0xdd   :  { %v461_v35 = vsel %vm460_vm0, %v459_v55, %v380_v54  ;;  %v1627_v54 = vld [vmem:[#allocation47_spill] sm:$0xff] }
  0xde   :  { %948 = vmatmul.mubr.f32.vlgmr.msra.gmra.mxu0 %v461_v35 }
 0x19e   :  { %v529_v0 = vpop.f32.mrf.mxu0 }
 0x19f   :  { %vm533_vm1 = vcmp.gt.f32.partialorder %v529_v0, 0.0  ;;  %v534_v25 = vmul.f32 0.2, %v529_v0 }
 0x1a0   :  { %v949_v48 = vpop.f32.mrf.mxu0 }
 0x1a1   :  { %v535_v45 = vsel %vm533_vm1, %v529_v0, %v534_v25  ;;  %v1628_v25 = vld [vmem:[#allocation42_spill] sm:$0xff] }
 0x1a2   :  { %953 = vmatmul.mubr.msk.f32.vlgmr.msra.gmra.mxu1 %vm537_vm2, %v535_v45  ;;  %v1629_v45 = vld [vmem:[#allocation43_spill] sm:$0xff] }
 0x262   :  { %v607_v56 = vpop.f32.mrf.mxu1 }
 0x263   :  { %v611_v61 = vsub.f32 0.0, %v607_v56 }
 0x264   :  { %v954_v10 = vpop.f32.mrf.mxu1 }
 0x265   :  { %v612_v6 = vmul.f32 1.442695, %v611_v61  ;;  %v1630_v61 = vld [vmem:[#allocation54_spill] sm:$0xff] }
 0x267   :  { %961 = vpow2.f32 %v612_v6  ;;  %v1631_v6 = vld [vmem:[#allocation55_spill] sm:$0xff] }
 0x274   :  { %v962_v41 = vpop.eup %961 }
 0x275   :  { %v614_v47 = vadd.f32 1.0, %v962_v41 }
 0x277   :  { %963 = vrcp.f32 %v614_v47 }
 0x284   :  { %v964_v44 = vpop.eup %963 }
 0x285   :  { %v619_v23 = vrot.slane %v964_v44, %v618_v16  ;;  %v686_v1 = vrot.slane %v964_v44, %v685_v62  ;;  %v1632_v44 = vld [vmem:[#allocation50_spill] sm:$0xff]  ;;  %v1633_v62 = vld [vmem:[#allocation51_spill] sm:$0xff] }
 0x287   :  { %625 = vbcast.lane.b32.xlu1 %v619_v23, 264  ;;  %621 = vbcast.lane.b32.xlu0 %v619_v23, 256 }
 0x28b   :  { %629 = vbcast.lane.b32.xlu1 %v619_v23, 272  ;;  %637 = vbcast.lane.b32.xlu0 %v619_v23, 288 }
 0x28f   :  { %633 = vbcast.lane.b32.xlu1 %v619_v23, 280  ;;  %645 = vbcast.lane.b32.xlu0 %v619_v23, 304 }
 0x293   :  { %641 = vbcast.lane.b32.xlu1 %v619_v23, 296  ;;  %653 = vbcast.lane.b32.xlu0 %v619_v23, 320 }
 0x297   :  { %649 = vbcast.lane.b32.xlu1 %v619_v23, 312  ;;  %661 = vbcast.lane.b32.xlu0 %v619_v23, 336 }
 0x29b   :  { %657 = vbcast.lane.b32.xlu1 %v619_v23, 328  ;;  %669 = vbcast.lane.b32.xlu0 %v619_v23, 352 }
 0x29f   :  { %665 = vbcast.lane.b32.xlu1 %v619_v23, 344  ;;  %677 = vbcast.lane.b32.xlu0 %v619_v23, 368 }
 0x2a3   :  { %673 = vbcast.lane.b32.xlu1 %v619_v23, 360  ;;  %688 = vbcast.lane.b32.xlu0 %v686_v1, 256 }
 0x2a7   :  { %681 = vbcast.lane.b32.xlu1 %v619_v23, 376  ;;  %696 = vbcast.lane.b32.xlu0 %v686_v1, 272 }
 0x2ab   :  { %692 = vbcast.lane.b32.xlu1 %v686_v1, 264  ;;  %704 = vbcast.lane.b32.xlu0 %v686_v1, 288 }
 0x2af   :  { %700 = vbcast.lane.b32.xlu1 %v686_v1, 280  ;;  %712 = vbcast.lane.b32.xlu0 %v686_v1, 304 }
 0x2b3   :  { %708 = vbcast.lane.b32.xlu1 %v686_v1, 296  ;;  %720 = vbcast.lane.b32.xlu0 %v686_v1, 320 }
 0x2b7   :  { %716 = vbcast.lane.b32.xlu1 %v686_v1, 312  ;;  %728 = vbcast.lane.b32.xlu0 %v686_v1, 336 }
 0x2bb   :  { %724 = vbcast.lane.b32.xlu1 %v686_v1, 328  ;;  %736 = vbcast.lane.b32.xlu0 %v686_v1, 352 }
 0x2bf   :  { %732 = vbcast.lane.b32.xlu1 %v686_v1, 344  ;;  %744 = vbcast.lane.b32.xlu0 %v686_v1, 368 }
 0x2c3   :  { %740 = vbcast.lane.b32.xlu1 %v686_v1, 360 }
 0x2c7   :  { %748 = vbcast.lane.b32.xlu1 %v686_v1, 376 }
 0x2f9   :  { %v626_v31 = vpop.permute.xlu1 %625  ;;  %v622_v43 = vpop.permute.xlu0 %621 }
 0x2fa   :  { %v752_v60 = vmul.f32 %v626_v31, %v1057_v8  ;;  %v753_v13 = vmul.f32 %v626_v31, %v1059_v9  ;;  %v750_v19 = vmul.f32 %v622_v43, %v1045_v2  ;;  %v751_v51 = vmul.f32 %v622_v43, %v1049_v4  ;;  %v1634_v31 = vld [vmem:[#allocation8_spill] sm:$0xff] }
 0x2fc   :  { %816 = vst [vmem:[#allocation5 + $0x10] sm:$0xff] %v752_v60  ;;  %817 = vst [vmem:[#allocation5 + $0x18] sm:$0xff] %v753_v13  ;;  %v1635_v60 = vld [vmem:[#allocation9_spill] sm:$0xff] }
 0x2fd   :  { %814 = vst [vmem:[#allocation5] sm:$0xff] %v750_v19  ;;  %815 = vst [vmem:[#allocation5 + $0x8] sm:$0xff] %v751_v51  ;;  %v630_v50 = vpop.permute.xlu1 %629  ;;  %v638_v42 = vpop.permute.xlu0 %637 }
 0x2fe   :  { %v754_v58 = vmul.f32 %v630_v50, %v1069_v14  ;;  %v755_v18 = vmul.f32 %v630_v50, %v1071_v15  ;;  %v758_v40 = vmul.f32 %v638_v42, %v1093_v26  ;;  %v759_v8 = vmul.f32 %v638_v42, %v1095_v27  ;;  %v1616_v27 = vld [vmem:[#allocation20_spill] sm:$0xff]  ;;  %v1636_v50 = vld [vmem:[#allocation58_spill] sm:$0xff] }
 0x300   :  { %818 = vst [vmem:[#allocation5 + $0x20] sm:$0xff] %v754_v58  ;;  %819 = vst [vmem:[#allocation5 + $0x28] sm:$0xff] %v755_v18  ;;  %v1637_v58 = vld [vmem:[#allocation59_spill] sm:$0xff] }
 0x301   :  { %822 = vst [vmem:[#allocation5 + $0x40] sm:$0xff] %v758_v40  ;;  %823 = vst [vmem:[#allocation5 + $0x48] sm:$0xff] %v759_v8  ;;  %v634_v2 = vpop.permute.xlu1 %633  ;;  %v646_v4 = vpop.permute.xlu0 %645  ;;  %v1638_v40 = vld [vmem:[#allocation12_spill] sm:$0xff] }
 0x302   :  { %v756_v9 = vmul.f32 %v634_v2, %v1081_v20  ;;  %v757_v33 = vmul.f32 %v634_v2, %v1083_v21  ;;  %v762_v49 = vmul.f32 %v646_v4, %v1117_v38  ;;  %v763_v14 = vmul.f32 %v646_v4, %v1119_v39  ;;  %v1620_v39 = vld [vmem:[#allocation26_spill] sm:$0xff]  ;;  %v1639_v2 = vld [vmem:[#allocation13_spill] sm:$0xff] }
 0x304   :  { %820 = vst [vmem:[#allocation5 + $0x30] sm:$0xff] %v756_v9  ;;  %821 = vst [vmem:[#allocation5 + $0x38] sm:$0xff] %v757_v33 }
 0x305   :  { %826 = vst [vmem:[#allocation5 + $0x60] sm:$0xff] %v762_v49  ;;  %827 = vst [vmem:[#allocation5 + $0x68] sm:$0xff] %v763_v14  ;;  %v642_v15 = vpop.permute.xlu1 %641  ;;  %v654_v26 = vpop.permute.xlu0 %653  ;;  %v1640_v49 = vld [vmem:[#allocation10_spill] sm:$0xff] }
 0x306   :  { %v760_v57 = vmul.f32 %v642_v15, %v1616_v27  ;;  %v761_v32 = vmul.f32 %v642_v15, %v1617_v24  ;;  %v766_v63 = vmul.f32 %v654_v26, %v1618_v5  ;;  %v767_v20 = vmul.f32 %v654_v26, %v1619_v30  ;;  %v1641_v15 = vld [vmem:[#allocation11_spill] sm:$0xff]  ;;  %v1642_v27 = vld [vmem:[#allocation16_spill] sm:$0xff]  ;;  %v1643_v24 = vld [vmem:[#allocation17_spill] sm:$0xff] }
 0x307   :  { %v1644_v30 = vld [vmem:[#allocation14_spill] sm:$0xff] }
 0x308   :  { %824 = vst [vmem:[#allocation5 + $0x50] sm:$0xff] %v760_v57  ;;  %825 = vst [vmem:[#allocation5 + $0x58] sm:$0xff] %v761_v32 }
 0x309   :  { %830 = vst [vmem:[#allocation5 + $0x80] sm:$0xff] %v766_v63  ;;  %831 = vst [vmem:[#allocation5 + $0x88] sm:$0xff] %v767_v20  ;;  %v650_v21 = vpop.permute.xlu1 %649  ;;  %v662_v38 = vpop.permute.xlu0 %661 }
 0x30a   :  { %v764_v52 = vmul.f32 %v650_v21, %v1620_v39  ;;  %v765_v7 = vmul.f32 %v650_v21, %v1621_v11  ;;  %v770_v12 = vmul.f32 %v662_v38, %v1622_v29  ;;  %v771_v22 = vmul.f32 %v662_v38, %v1623_v3  ;;  %v1645_v21 = vld [vmem:[#allocation15_spill] sm:$0xff]  ;;  %v1646_v39 = vld [vmem:[#allocation22_spill] sm:$0xff] }
 0x30b   :  { %v1647_v11 = vld [vmem:[#allocation23_spill] sm:$0xff]  ;;  %v1648_v3 = vld [vmem:[#allocation18_spill] sm:$0xff] }
 0x30c   :  { %828 = vst [vmem:[#allocation5 + $0x70] sm:$0xff] %v764_v52  ;;  %829 = vst [vmem:[#allocation5 + $0x78] sm:$0xff] %v765_v7 }
 0x30d   :  { %834 = vst [vmem:[#allocation5 + $0xa0] sm:$0xff] %v770_v12  ;;  %835 = vst [vmem:[#allocation5 + $0xa8] sm:$0xff] %v771_v22  ;;  %v658_v59 = vpop.permute.xlu1 %657  ;;  %v670_v28 = vpop.permute.xlu0 %669 }
 0x30e   :  { %v768_v46 = vmul.f32 %v658_v59, %v1624_v53  ;;  %v769_v17 = vmul.f32 %v658_v59, %v1625_v37  ;;  %v774_v55 = vmul.f32 %v670_v28, %v1626_v36  ;;  %v775_v35 = vmul.f32 %v670_v28, %v1627_v54  ;;  %v1649_v59 = vld [vmem:[#allocation19_spill] sm:$0xff]  ;;  %v1650_v53 = vld [vmem:[#allocation28_spill] sm:$0xff]  ;;  %v1651_v37 = vld [vmem:[#allocation29_spill] sm:$0xff] }
 0x30f   :  { %v1652_v54 = vld [vmem:[#allocation24_spill] sm:$0xff] }
 0x310   :  { %832 = vst [vmem:[#allocation5 + $0x90] sm:$0xff] %v768_v46  ;;  %833 = vst [vmem:[#allocation5 + $0x98] sm:$0xff] %v769_v17 }
 0x311   :  { %838 = vst [vmem:[#allocation5 + $0xc0] sm:$0xff] %v774_v55  ;;  %839 = vst [vmem:[#allocation5 + $0xc8] sm:$0xff] %v775_v35  ;;  %v666_v34 = vpop.permute.xlu1 %665  ;;  %v678_v0 = vpop.permute.xlu0 %677 }
 0x312   :  { %v772_v48 = vmul.f32 %v666_v34, %v1628_v25  ;;  %v773_v56 = vmul.f32 %v666_v34, %v1629_v45  ;;  %v778_v10 = vmul.f32 %v678_v0, %v1630_v61  ;;  %v779_v41 = vmul.f32 %v678_v0, %v1631_v6  ;;  %v1653_v34 = vld [vmem:[#allocation25_spill] sm:$0xff]  ;;  %v1654_v25 = vld [vmem:[#allocation36_spill] sm:$0xff] }
 0x313   :  { %v1655_v45 = vld [vmem:[#allocation37_spill] sm:$0xff]  ;;  %v1656_v6 = vld [vmem:[#allocation32_spill] sm:$0xff] }
 0x314   :  { %836 = vst [vmem:[#allocation5 + $0xb0] sm:$0xff] %v772_v48  ;;  %837 = vst [vmem:[#allocation5 + $0xb8] sm:$0xff] %v773_v56 }
 0x315   :  { %842 = vst [vmem:[#allocation5 + $0xe0] sm:$0xff] %v778_v10  ;;  %843 = vst [vmem:[#allocation5 + $0xe8] sm:$0xff] %v779_v41  ;;  %v674_v47 = vpop.permute.xlu1 %673  ;;  %v689_v16 = vpop.permute.xlu0 %688 }
 0x316   :  { %v776_v23 = vmul.f32 %v674_v47, %v1632_v44  ;;  %v777_v1 = vmul.f32 %v674_v47, %v1633_v62  ;;  %v782_v43 = vmul.f32 %v689_v16, %v1634_v31  ;;  %v783_v13 = vmul.f32 %v689_v16, %v1635_v60  ;;  %v1657_v47 = vld [vmem:[#allocation33_spill] sm:$0xff]  ;;  %v1658_v44 = vld [vmem:[#allocation44_spill] sm:$0xff] }
 0x317   :  { %v1659_v62 = vld [vmem:[#allocation45_spill] sm:$0xff]  ;;  %v1660_v60 = vld [vmem:[#allocation40_spill] sm:$0xff] }
 0x318   :  { %840 = vst [vmem:[#allocation5 + $0xd0] sm:$0xff] %v776_v23  ;;  %841 = vst [vmem:[#allocation5 + $0xd8] sm:$0xff] %v777_v1 }
 0x319   :  { %846 = vst [vmem:[#allocation5 + $0x100] sm:$0xff] %v782_v43  ;;  %847 = vst [vmem:[#allocation5 + $0x108] sm:$0xff] %v783_v13  ;;  %v682_v19 = vpop.permute.xlu1 %681  ;;  %v697_v51 = vpop.permute.xlu0 %696 }
 0x31a   :  { %v780_v42 = vmul.f32 %v682_v19, %v1636_v50  ;;  %v781_v18 = vmul.f32 %v682_v19, %v1637_v58  ;;  %v786_v8 = vmul.f32 %v697_v51, %v1638_v40  ;;  %v787_v4 = vmul.f32 %v697_v51, %v1639_v2  ;;  %v1661_v19 = vld [vmem:[#allocation41_spill] sm:$0xff]  ;;  %v1662_v50 = vld [vmem:[#allocation52_spill] sm:$0xff] }
 0x31b   :  { %v1663_v58 = vld [vmem:[#allocation53_spill] sm:$0xff] }
 0x31c   :  { %844 = vst [vmem:[#allocation5 + $0xf0] sm:$0xff] %v780_v42  ;;  %845 = vst [vmem:[#allocation5 + $0xf8] sm:$0xff] %v781_v18 }
 0x31d   :  { %850 = vst [vmem:[#allocation5 + $0x120] sm:$0xff] %v786_v8  ;;  %851 = vst [vmem:[#allocation5 + $0x128] sm:$0xff] %v787_v4  ;;  %v693_v9 = vpop.permute.xlu1 %692  ;;  %v705_v33 = vpop.permute.xlu0 %704  ;;  %v1664_v8 = vld [vmem:[#allocation48_spill] sm:$0xff]  ;;  %v1665_v4 = vld [vmem:[#allocation49_spill] sm:$0xff] }
 0x31e   :  { %v784_v14 = vmul.f32 %v693_v9, %v1640_v49  ;;  %v785_v26 = vmul.f32 %v693_v9, %v1641_v15  ;;  %v790_v57 = vmul.f32 %v705_v33, %v1642_v27  ;;  %v791_v32 = vmul.f32 %v705_v33, %v1643_v24  ;;  %v1666_v49 = vld [vmem:[#allocation56_spill] sm:$0xff]  ;;  %v1667_v15 = vld [vmem:[#allocation57_spill] sm:$0xff] }
 0x320   :  { %848 = vst [vmem:[#allocation5 + $0x110] sm:$0xff] %v784_v14  ;;  %849 = vst [vmem:[#allocation5 + $0x118] sm:$0xff] %v785_v26 }
 0x321   :  { %854 = vst [vmem:[#allocation5 + $0x140] sm:$0xff] %v790_v57  ;;  %855 = vst [vmem:[#allocation5 + $0x148] sm:$0xff] %v791_v32  ;;  %v701_v5 = vpop.permute.xlu1 %700  ;;  %v713_v63 = vpop.permute.xlu0 %712 }
 0x322   :  { %v788_v20 = vmul.f32 %v701_v5, %v1644_v30  ;;  %v789_v38 = vmul.f32 %v701_v5, %v1645_v21  ;;  %v794_v52 = vmul.f32 %v713_v63, %v1646_v39  ;;  %v795_v7 = vmul.f32 %v713_v63, %v1647_v11 }
 0x324   :  { %852 = vst [vmem:[#allocation5 + $0x130] sm:$0xff] %v788_v20  ;;  %853 = vst [vmem:[#allocation5 + $0x138] sm:$0xff] %v789_v38 }
 0x325   :  { %858 = vst [vmem:[#allocation5 + $0x160] sm:$0xff] %v794_v52  ;;  %859 = vst [vmem:[#allocation5 + $0x168] sm:$0xff] %v795_v7  ;;  %v709_v29 = vpop.permute.xlu1 %708  ;;  %v721_v12 = vpop.permute.xlu0 %720 }
 0x326   :  { %v792_v22 = vmul.f32 %v709_v29, %v1648_v3  ;;  %v793_v28 = vmul.f32 %v709_v29, %v1649_v59  ;;  %v798_v46 = vmul.f32 %v721_v12, %v1650_v53  ;;  %v799_v17 = vmul.f32 %v721_v12, %v1651_v37 }
 0x328   :  { %856 = vst [vmem:[#allocation5 + $0x150] sm:$0xff] %v792_v22  ;;  %857 = vst [vmem:[#allocation5 + $0x158] sm:$0xff] %v793_v28 }
 0x329   :  { %862 = vst [vmem:[#allocation5 + $0x180] sm:$0xff] %v798_v46  ;;  %863 = vst [vmem:[#allocation5 + $0x188] sm:$0xff] %v799_v17  ;;  %v717_v36 = vpop.permute.xlu1 %716  ;;  %v729_v55 = vpop.permute.xlu0 %728 }
 0x32a   :  { %v796_v35 = vmul.f32 %v717_v36, %v1652_v54  ;;  %v797_v0 = vmul.f32 %v717_v36, %v1653_v34  ;;  %v802_v48 = vmul.f32 %v729_v55, %v1654_v25  ;;  %v803_v56 = vmul.f32 %v729_v55, %v1655_v45 }
 0x32c   :  { %860 = vst [vmem:[#allocation5 + $0x170] sm:$0xff] %v796_v35  ;;  %861 = vst [vmem:[#allocation5 + $0x178] sm:$0xff] %v797_v0 }
 0x32d   :  { %866 = vst [vmem:[#allocation5 + $0x1a0] sm:$0xff] %v802_v48  ;;  %867 = vst [vmem:[#allocation5 + $0x1a8] sm:$0xff] %v803_v56  ;;  %v725_v61 = vpop.permute.xlu1 %724  ;;  %v737_v10 = vpop.permute.xlu0 %736 }
 0x32e   :  { %v800_v41 = vmul.f32 %v725_v61, %v1656_v6  ;;  %v801_v16 = vmul.f32 %v725_v61, %v1657_v47  ;;  %v806_v23 = vmul.f32 %v737_v10, %v1658_v44  ;;  %v807_v1 = vmul.f32 %v737_v10, %v1659_v62 }
 0x330   :  { %864 = vst [vmem:[#allocation5 + $0x190] sm:$0xff] %v800_v41  ;;  %865 = vst [vmem:[#allocation5 + $0x198] sm:$0xff] %v801_v16 }
 0x331   :  { %870 = vst [vmem:[#allocation5 + $0x1c0] sm:$0xff] %v806_v23  ;;  %871 = vst [vmem:[#allocation5 + $0x1c8] sm:$0xff] %v807_v1  ;;  %v733_v31 = vpop.permute.xlu1 %732  ;;  %v745_v43 = vpop.permute.xlu0 %744 }
 0x332   :  { %v804_v13 = vmul.f32 %v733_v31, %v1660_v60  ;;  %v805_v51 = vmul.f32 %v733_v31, %v1661_v19  ;;  %v810_v42 = vmul.f32 %v745_v43, %v1662_v50  ;;  %v811_v18 = vmul.f32 %v745_v43, %v1663_v58 }
 0x334   :  { %868 = vst [vmem:[#allocation5 + $0x1b0] sm:$0xff] %v804_v13  ;;  %869 = vst [vmem:[#allocation5 + $0x1b8] sm:$0xff] %v805_v51 }
 0x335   :  { %874 = vst [vmem:[#allocation5 + $0x1e0] sm:$0xff] %v810_v42  ;;  %875 = vst [vmem:[#allocation5 + $0x1e8] sm:$0xff] %v811_v18  ;;  %v741_v40 = vpop.permute.xlu1 %740 }
 0x336   :  { %v808_v2 = vmul.f32 %v741_v40, %v1664_v8  ;;  %v809_v9 = vmul.f32 %v741_v40, %v1665_v4 }
 0x338   :  { %872 = vst [vmem:[#allocation5 + $0x1d0] sm:$0xff] %v808_v2  ;;  %873 = vst [vmem:[#allocation5 + $0x1d8] sm:$0xff] %v809_v9 }
 0x339   :  { %v749_v33 = vpop.permute.xlu1 %748 }
 0x33a   :  { %v812_v14 = vmul.f32 %v749_v33, %v1666_v49  ;;  %v813_v26 = vmul.f32 %v749_v33, %v1667_v15 }
 0x33c   :  { %876 = vst [vmem:[#allocation5 + $0x1f0] sm:$0xff] %v812_v14  ;;  %877 = vst [vmem:[#allocation5 + $0x1f8] sm:$0xff] %v813_v26 }
 0x33d   :  { %996 = shalt.err (!%p993_p9)
}
 0x33e   :  { %889 = dma.vmem_to_hbm [thread:$0]  %s884_s25, 8192, %s1511_s3, [#allocation4], %s1010_s15, %s1010_s15, %s1011_s16  }
 0x33f   :  { %1007 = dma.done.wait [#allocation4], 8192  }
 0x340   :  { %1008 = vsyncadd [#allocation4], 4294959104 }
 0x341   :  { %893 = vsyncpa [#allocation3], 1 }
 0x342   :  { %894 = vsyncpa [#allocation4], 1 }

</bundles_post_ra>
